<compile_context>
chip_gen: v7x
topology: tpu7x:2x2x1
jax: 0.10.0
libtpu: 0.0.40
codegen_flags: <defaults>
</compile_context>

<pallas_src>
import jax
import jax.numpy as jnp
from jax import lax
from jax.experimental import pallas as pl
from jax.experimental.pallas import tpu as pltpu

_LARGE_VMEM_BYTES = 100 * 1024 * 1024  # v5e/v6e have 128 MiB, v7x has 64 MiB


def _vmem_capacity_bytes():
    """Physical VMEM of the current generation (conservative fallback = v7x)."""
    try:
        cap = getattr(pltpu.get_tpu_info(), "vmem_capacity_bytes", None)
        if cap:
            return int(cap)
    except Exception:
        pass
    return 64 * 1024 * 1024


def _choose_inner_view(num_joints, height, width, itemsize):
    """(G, S, C) with G*S*C == J*H*W; lane-dense, matched to the dtype's packed tile."""
    n = num_joints * height * width
    s_native = max(8, 32 // max(1, itemsize))  # f32 -> 8, bf16 -> 16, int8/fp8 -> 32
    for s in (s_native, 8):
        if n % (s * 128) == 0:
            return n // (s * 128), s, 128
    if n % 128 == 0:
        return 1, n // 128, 128
    # TODO(synk): heatmap sizes not a multiple of 128 fall back to a (1, J, H*W)
    # view (partially masked lanes); still correct, just less lane-efficient.
    return 1, num_joints, height * width


def _pick_batch_block(batch, per_b_bytes, target_bytes):
    """Batch rows per block.  Prefer an exact divisor of `batch` (no ragged tail)
    when one gets within 2x of the byte target; otherwise take the full-size
    block and let the kernel mask the ragged tail (no padding copy)."""
    ideal = int(max(1, min(batch, target_bytes // max(1, per_b_bytes))))
    best_div = 1
    for d in range(1, batch + 1):
        if batch % d == 0 and d <= ideal:
            best_div = d
    if best_div == batch or 2 * best_div > ideal:
        return best_div
    return ideal


def _make_partial_kernel(bblk, gblk, batch_size, needs_mask, nslots):
    """Kernel: out_ref[S, C] = sum over the block's (bblk, gblk) rows of (a-b)^2.

    a_ref, b_ref : (bblk, gblk, S, C) tiles (the T<->B swap for targets is done
                   entirely by its BlockSpec index_map — no transpose in HBM).
    out_ref      : (S, C) f32 partial, unique per grid step (all axes parallel).
    """
    n_rows = bblk * gblk
    n_groups = n_rows // nslots
    n_rem = n_rows % nslots

    def kernel(a_ref, b_ref, out_ref):
        b0 = pl.program_id(1) * bblk  # first batch row covered by this block

        def row_sq(r):
            """Squared diff of one (S, C) row; zeroed if past the true batch end."""
            if gblk == 1:
                bi, gi = r, 0
            else:
                bi, gi = r // gblk, r % gblk
            d = (a_ref[bi, gi, :, :].astype(jnp.float32)
                 - b_ref[bi, gi, :, :].astype(jnp.float32))
            dd = d * d
            if needs_mask:
                # Ragged last batch block: OOB rows of the tile hold unspecified
                # data; select (NaN/inf-safe) zeros them before accumulation.
                dd = jnp.where(b0 + bi < batch_size, dd, jnp.zeros_like(dd))
            return dd

        zero = jnp.zeros(out_ref.shape, jnp.float32)
        accs = (zero,) * nslots

        if n_groups > 0:
            def body(g, accs):
                base = g * nslots
                # nslots independent accumulators -> no serial add chain into
                # a single vreg; a few vregs in flight per iteration.
                return tuple(accs[k] + row_sq(base + k) for k in range(nslots))

            unroll = True if n_groups <= 8 else 4
            accs = lax.fori_loop(0, n_groups, body, accs, unroll=unroll)

        accs = list(accs)
        base = n_groups * nslots
        for k in range(n_rem):  # static remainder rows
            accs[k] = accs[k] + row_sq(base + k)

        total = accs[0]
        for k in range(1, nslots):
            total = total + accs[k]
        out_ref[...] = total

    return kernel


def multi_joints_mse_loss(outputs, targets, *, max_block_bytes=None):
    """outputs: (T, B, J, H, W); targets: (B, T, J, H, W).  Returns scalar f32 loss."""
    T, B, J, H, W = outputs.shape
    assert targets.shape == (B, T, J, H, W), (outputs.shape, targets.shape)
    assert outputs.dtype == targets.dtype

    itemsize = jnp.dtype(outputs.dtype).itemsize
    G, S, C = _choose_inner_view(J, H, W, itemsize)

    # Contiguous regroup of the trailing dims -> free (no transpose, no copy);
    # the T<->B layout swap for targets is folded into its BlockSpec index_map.
    a = outputs.reshape(T, B, G, S, C)
    b = targets.reshape(B, T, G, S, C)

    # Generation-aware per-input, per-buffer block-byte target.
    vmem_cap = _vmem_capacity_bytes()
    if max_block_bytes is None:
        max_block_bytes = (8 * 1024 * 1024 if vmem_cap >= _LARGE_VMEM_BYTES
                           else 4 * 1024 * 1024)

    per_row_bytes = S * C * itemsize
    per_b_bytes = G * per_row_bytes

    if per_b_bytes > max_block_bytes:
        # Huge heatmaps: split G so depth-2 double buffering always fits VMEM.
        bblk, nb = 1, B
        gblk = 1
        for d in range(1, G + 1):
            if G % d == 0 and d * per_row_bytes <= max_block_bytes:
                gblk = d
        ng = G // gblk
    else:
        gblk, ng = G, 1
        bblk = _pick_batch_block(B, per_b_bytes, max_block_bytes)
        nb = (B + bblk - 1) // bblk
    needs_mask = (B % bblk) != 0

    block_bytes = bblk * gblk * per_row_bytes
    # 2 inputs x 2 pipeline buffers + partial outputs + slack, never above 75%
    # of this generation's physical VMEM.
    vmem_limit = int(min(0.75 * vmem_cap,
                         max(16 * 1024 * 1024, 4 * block_bytes + 2 * 1024 * 1024)))

    n_rows = bblk * gblk
    nslots = min(4, n_rows)
    kernel = _make_partial_kernel(bblk, gblk, B, needs_mask, nslots)

    n_elems = T * B * J * H * W
    cost = pl.CostEstimate(
        flops=3 * n_elems,
        transcendentals=0,
        bytes_accessed=2 * n_elems * itemsize + T * nb * ng * S * C * 4,
    )

    partials = pl.pallas_call(
        kernel,
        out_shape=jax.ShapeDtypeStruct((T, nb, ng, S, C), jnp.float32),
        grid_spec=pltpu.PrefetchScalarGridSpec(
            num_scalar_prefetch=0,
            grid=(T, nb, ng),
            in_specs=[
                # outputs view (T, B, G, S, C): squeeze t, block batch and G.
                pl.BlockSpec((None, bblk, gblk, S, C),
                             lambda t, i, g: (t, i, g, 0, 0)),
                # targets view (B, T, G, S, C): same data, coordinates swapped in
                # the index_map -> the "transpose" rides on the tile DMA for free.
                pl.BlockSpec((bblk, None, gblk, S, C),
                             lambda t, i, g: (i, t, g, 0, 0)),
            ],
            out_specs=pl.BlockSpec((None, None, None, S, C),
                                   lambda t, i, g: (t, i, g, 0, 0)),
        ),
        compiler_params=pltpu.CompilerParams(
            dimension_semantics=("parallel", "parallel", "parallel"),
            vmem_limit_bytes=vmem_limit,
        ),
        cost_estimate=cost,
    )(a, b)

    # 0.5 * (1/T) * (1/J) * mean over (B, H*W)  ==  0.5 * sum(d^2) / (T*J*B*H*W).
    return 0.5 * jnp.sum(partials) / jnp.float32(n_elems)


def _reference_loss(outputs, targets):
    """Pure-JAX reference mirroring the PyTorch loop structure (f32 math)."""
    T, B, J, H, W = outputs.shape
    o = outputs.astype(jnp.float32)
    g = targets.astype(jnp.float32)
    loss = 0.0
    for ti in range(T):
        out_t = o[ti].reshape(B, J, H * W)
        tgt_t = g[:, ti].reshape(B, J, H * W)
        inner = 0.0
        for j in range(J):
            inner = inner + 0.5 * jnp.mean((out_t[:, j] - tgt_t[:, j]) ** 2)
        loss = loss + inner / J
    return loss / T


if __name__ == "__main__":
    key = jax.random.PRNGKey(0)

    # Case 1: small friendly shape (single block per t, all-parallel grid).
    T, B, J, H, W = 2, 2, 4, 16, 16
    k1, k2, key = jax.random.split(key, 3)
    outputs = jax.random.normal(k1, (T, B, J, H, W), dtype=jnp.float32)
    targets = jax.random.normal(k2, (B, T, J, H, W), dtype=jnp.float32)
    loss = jax.block_until_ready(multi_joints_mse_loss(outputs, targets))
    ref = jax.block_until_ready(_reference_loss(outputs, targets))
    assert jnp.allclose(loss, ref, rtol=1e-5, atol=1e-6), (loss, ref)

    # Case 2: bf16 inputs, awkward batch (B=5) with a tiny forced block size to
    # exercise the multi-block grid, the ragged-tail mask and the dtype-aware
    # (16, 128) inner view.
    T, B, J, H, W = 3, 5, 8, 16, 16
    k1, k2, key = jax.random.split(key, 3)
    outputs = jax.random.normal(k1, (T, B, J, H, W), dtype=jnp.bfloat16)
    targets = jax.random.normal(k2, (B, T, J, H, W), dtype=jnp.bfloat16)
    loss2 = jax.block_until_ready(
        multi_joints_mse_loss(outputs, targets, max_block_bytes=8 * 1024))
    ref2 = jax.block_until_ready(_reference_loss(outputs, targets))
    assert jnp.allclose(loss2, ref2, rtol=1e-4, atol=1e-5), (loss2, ref2)

    print("KERNEL_OK")
</pallas_src>

<mosaic_0001>
module attributes {stable_mosaic.version = 11 : i64} {
  func.func @kernel(%arg0: i32, %arg1: i32, %arg2: i32, %arg3: memref<1x2x1x8x128xf32, #tpu.memory_space<vmem>>, %arg4: memref<2x1x1x8x128xf32, #tpu.memory_space<vmem>>, %arg5: memref<1x1x1x8x128xf32, #tpu.memory_space<vmem>>) attributes {dimension_semantics = [#tpu.dimension_semantics<parallel>, #tpu.dimension_semantics<parallel>, #tpu.dimension_semantics<parallel>], iteration_bounds = array<i64: 2, 1, 1>, scalar_prefetch = 0 : i64, scratch_operands = 0 : i64, tpu.core_type = #tpu.core_type<tc>, window_params = [{transform_indices = @transform_0, window_bounds = array<i64: 1, 2, 1, 8, 128>}, {transform_indices = @transform_1, window_bounds = array<i64: 2, 1, 1, 8, 128>}, {transform_indices = @transform_2, window_bounds = array<i64: 1, 1, 1, 8, 128>}]} {
    %cst = arith.constant 0.000000e+00 : f32
    %0 = vector.broadcast %cst : f32 to vector<8x128xf32>
    %c0_i32 = arith.constant 0 : i32
    %c2_i32 = arith.constant 2 : i32
    %1 = arith.muli %c0_i32, %c2_i32 : i32
    %c0_i32_0 = arith.constant 0 : i32
    %2 = arith.addi %1, %c0_i32_0 : i32
    %c0 = arith.constant 0 : index
    %3 = arith.index_cast %2 : i32 to index
    %c0_1 = arith.constant 0 : index
    %c0_2 = arith.constant 0 : index
    %c0_3 = arith.constant 0 : index
    %4 = vector.load %arg3[%c0, %3, %c0_1, %c0_2, %c0_3] : memref<1x2x1x8x128xf32, #tpu.memory_space<vmem>>, vector<1x1x1x8x128xf32>
    %5 = vector.shape_cast %4 : vector<1x1x1x8x128xf32> to vector<8x128xf32>
    %6 = arith.index_cast %2 : i32 to index
    %c0_4 = arith.constant 0 : index
    %c0_5 = arith.constant 0 : index
    %c0_6 = arith.constant 0 : index
    %c0_7 = arith.constant 0 : index
    %7 = vector.load %arg4[%6, %c0_4, %c0_5, %c0_6, %c0_7] : memref<2x1x1x8x128xf32, #tpu.memory_space<vmem>>, vector<1x1x1x8x128xf32>
    %8 = vector.shape_cast %7 : vector<1x1x1x8x128xf32> to vector<8x128xf32>
    %9 = arith.subf %5, %8 : vector<8x128xf32>
    %10 = arith.mulf %9, %9 : vector<8x128xf32>
    %11 = arith.addf %0, %10 : vector<8x128xf32>
    %c1_i32 = arith.constant 1 : i32
    %12 = arith.addi %1, %c1_i32 : i32
    %c0_8 = arith.constant 0 : index
    %13 = arith.index_cast %12 : i32 to index
    %c0_9 = arith.constant 0 : index
    %c0_10 = arith.constant 0 : index
    %c0_11 = arith.constant 0 : index
    %14 = vector.load %arg3[%c0_8, %13, %c0_9, %c0_10, %c0_11] : memref<1x2x1x8x128xf32, #tpu.memory_space<vmem>>, vector<1x1x1x8x128xf32>
    %15 = vector.shape_cast %14 : vector<1x1x1x8x128xf32> to vector<8x128xf32>
    %16 = arith.index_cast %12 : i32 to index
    %c0_12 = arith.constant 0 : index
    %c0_13 = arith.constant 0 : index
    %c0_14 = arith.constant 0 : index
    %c0_15 = arith.constant 0 : index
    %17 = vector.load %arg4[%16, %c0_12, %c0_13, %c0_14, %c0_15] : memref<2x1x1x8x128xf32, #tpu.memory_space<vmem>>, vector<1x1x1x8x128xf32>
    %18 = vector.shape_cast %17 : vector<1x1x1x8x128xf32> to vector<8x128xf32>
    %19 = arith.subf %15, %18 : vector<8x128xf32>
    %20 = arith.mulf %19, %19 : vector<8x128xf32>
    %21 = arith.addf %0, %20 : vector<8x128xf32>
    %c1_i32_16 = arith.constant 1 : i32
    %22 = arith.addf %11, %21 : vector<8x128xf32>
    %c0_17 = arith.constant 0 : index
    %c0_18 = arith.constant 0 : index
    %c0_19 = arith.constant 0 : index
    %c0_20 = arith.constant 0 : index
    %c0_21 = arith.constant 0 : index
    %23 = vector.load %arg5[%c0_17, %c0_18, %c0_19, %c0_20, %c0_21] : memref<1x1x1x8x128xf32, #tpu.memory_space<vmem>>, vector<1x1x1x8x128xf32>
    %24 = vector.shape_cast %23 : vector<1x1x1x8x128xf32> to vector<8x128xf32>
    %25 = vector.shape_cast %22 : vector<8x128xf32> to vector<1x1x1x8x128xf32>
    tpu.vector_store %arg5[%c0_17, %c0_18, %c0_19, %c0_20, %c0_21], %25 {strides = array<i32>} : memref<1x1x1x8x128xf32, #tpu.memory_space<vmem>>, vector<1x1x1x8x128xf32>,
    return
  }
  func.func @transform_0(%arg0: i32, %arg1: i32, %arg2: i32) -> (i32, i32, i32, i32, i32) {
    %c0_i32 = arith.constant 0 : i32
    %c0_i32_0 = arith.constant 0 : i32
    %c0_i32_1 = arith.constant 0 : i32
    return %arg0, %arg1, %arg2, %c0_i32, %c0_i32_0 : i32, i32, i32, i32, i32
  }
  func.func @transform_1(%arg0: i32, %arg1: i32, %arg2: i32) -> (i32, i32, i32, i32, i32) {
    %c0_i32 = arith.constant 0 : i32
    %c0_i32_0 = arith.constant 0 : i32
    %c0_i32_1 = arith.constant 0 : i32
    return %arg1, %arg0, %arg2, %c0_i32, %c0_i32_0 : i32, i32, i32, i32, i32
  }
  func.func @transform_2(%arg0: i32, %arg1: i32, %arg2: i32) -> (i32, i32, i32, i32, i32) {
    %c0_i32 = arith.constant 0 : i32
    %c0_i32_0 = arith.constant 0 : i32
    %c0_i32_1 = arith.constant 0 : i32
    return %arg0, %arg1, %arg2, %c0_i32, %c0_i32_0 : i32, i32, i32, i32, i32
  }
}

</mosaic_0001>

<bundles_post_ra>
// kernel: tpu_custom_call.1
= control target key start
LH: loop header
LB: loop body
LE: loop exit
PB: predicated region body
PF: predicated region fallthrough
CT: control target
= control target key end

     0   :  { %7 = vsyncpa [#allocation3], 0  ;;  %s872_s0 = inlined_call_operand.hbm [shape: f32[2,2,1,8,128], index: 0, kind: input, shape index: {}]   ;;  %s873_s1 = inlined_call_operand.hbm [shape: f32[2,2,1,8,128], index: 1, kind: input, shape index: {}]   ;;  %s874_s2 = inlined_call_operand.hbm [shape: f32[2,1,1,8,128], index: 2, kind: output, shape index: {}]  }
   0x1   :  { %9 = vsyncpa [#allocation3 + $0x1], 0 }
   0x2   :  { %10 = vsyncpa [#allocation6], 0 }
   0x3   :  { %12 = vsyncpa [#allocation6 + $0x1], 0 }
   0x4   :  { %13 = vsyncpa [#allocation4], 0 }
   0x5   :  { %15 = vsyncpa [#allocation4 + $0x1], 0  ;;  %s643_s9 = smov 0   ;;  %s645_s10 = smov 0  }
   0x6   :  { %s647_s11 = smov 0   ;;  %s649_s12 = smov 0  }
   0x7   :  { %s651_s13 = smov 0   ;;  %s653_s14 = smov 0  }
   0x8 LB: > { %s384_s15 = sadd.s32 4294967295, %s620_s14   ;;  %s385_s16 = sadd.s32 4294967294, %s620_s14   ;;  %s620_s14 = sphi %s653_s14, %s21_s14   ;;  %s616_s13 = sphi %s651_s13, %s891_s13   ;;  %s612_s12 = sphi %s649_s12, %s890_s12   ;;  %s608_s11 = sphi %s647_s11, %s889_s11   ;;  %s604_s10 = sphi %s645_s10, %s888_s10   ;;  %s600_s9 = sphi %s643_s9, %s887_s9  }
   0x9   : > { %s40_s17 = sadd.s32 1, %s616_s13  ;;  %s51_s18 = sadd.s32 1, %s608_s11 }
   0xa   : > { %p42_p0 = scmp.ge.s32.totalorder %s40_s17, 2  ;;  %p58_p1 = scmp.ne.s32.totalorder %s608_s11, %s604_s10 }
   0xb   : > { %p59_p2 = scmp.eq.s32.totalorder %s620_s14, 0  ;;  %p64_p3 = scmp.ne.s32.totalorder %s604_s10, %s600_s9 }
   0xc   : > { %s893_s17 = smov (%p42_p0, %s40_s17), 0  ;;  %p65_p5 = scmp.eq.s32.totalorder %s384_s15, 0 }
   0xd   : > { %p684_p4 = por %p59_p2, %p58_p1  ;;  %s44_s20 = ssub.s32 %s616_s13, %s893_s17 }
   0xe   : > { %p122_p6 = scmp.eq.s32.totalorder %s384_s15, 1  ;;  %p49_p7 = scmp.eq.s32.totalorder %s44_s20, 0 }
   0xf   : > { %p690_p8 = por %p65_p5, %p64_p3  ;;  %p128_p10 = scmp.eq.s32.totalorder %s385_s16, 1 }
  0x10   : > { %p694_p9 = por %p122_p6, %p58_p1  ;;  %p421_p13 = scmp.lt.s32.totalorder %s620_s14, 2 }
  0x11   : > { %s878_s21 = scalar_select %p690_p8, 1, 0 }
  0x12   : > { %s879_s22 = scalar_select %p694_p9, 1, 0 }
  0x13   : > { %s699_s23 = scalar_select %p49_p7, %s608_s11, %s51_s18  }
  0x14   : > { %p701_p11 = por %p128_p10, %p64_p3  ;;  %s708_s25 = sand.u32 1, %s608_s11  }
  0x15   : > { %s388_s26 = sshll.u32 %s708_s25, 4  ;;  %s403_s27 = sshll.u32 %s616_s13, 8 }
  0x16   : > { %s880_s24 = scalar_select %p701_p11, 1, 0 }
  0x17   : > { %s715_s30 = scalar_lea.hbm %s872_s0, %s403_s27  ;;  %s152_s3 = scalar_lea.vmem [#allocation2], %s388_s26 }
  0x18   : > { %s162_s4 = sshll.u32 %s152_s3, 4  ;;  %p723_p0 = pnand %p421_p13, %p684_p4  ;;  %s719_s4 = int_to_ptr.vmem [resolvable:$true] %s162_s4 }
  0x19   : > { %s149_s6 = scalar_lea.sflag [#allocation3], %s708_s25  ;;  %s474_s7 = scalar_lea.hbm %s715_s30, 256 }
  0x1a   : > { %p475_p1 = scmp.ne.s32.totalorder %s715_s30, %s474_s7  ;;  %p476_p2 = pneg %p723_p0 }
  0x1b   : > { %s479_s16 = scalar_lea.hbm %s872_s0, 512  ;;  %p480_p4 = scmp.lt.u32.totalorder %s715_s30, %s872_s0 }
  0x1c   : > { %p477_p3 = pnand %p476_p2, %p475_p1  ;;  %p481_p6 = scmp.lt.u32.totalorder %s479_s16, %s474_s7 }
  0x1d   : > { %p483_p10 = scmp.lt.u32.totalorder %s474_s7, %s715_s30 }
  0x1e   : > { %p478_p5 = pneg %p477_p3  ;;  %p482_p7 = por %p481_p6, %p480_p4 }
  0x20   : > { %p484_p13 = por %p483_p10, %p482_p7 }
  0x22   : > { %p485_p12 = pnand %p484_p13, %p478_p5 }
  0x24   : > { %488 = shalt.err (!%p485_p12)
}
  0x25   : > { %s489_s20 = scalar_lea.vmem %s719_s4, 256  ;;  %s622_s27 = smov [#allocation2]  }
  0x26   : > { %p490_p1 = scmp.ne.s32.totalorder %s719_s4, %s489_s20  ;;  %s494_s28 = sshll.u32 %s622_s27, 4  ;;  %s495_s28 = int_to_ptr.vmem [resolvable:$false] %s494_s28 }
  0x27   : > { %s496_s29 = scalar_lea.vmem %s495_s28, 512  ;;  %p497_p9 = scmp.lt.s32.totalorder %s719_s4, %s495_s28 }
  0x28   : > { %p492_p3 = pnand %p490_p1, %p476_p2  ;;  %p498_p4 = scmp.lt.s32.totalorder %s496_s29, %s489_s20 }
  0x2a   : > { %p493_p11 = pneg %p492_p3  ;;  %p499_p6 = por %p498_p4, %p497_p9 }
  0x2c   : > { %p500_p7 = pnand %p499_p6, %p493_p11 }
  0x2e   : > { %503 = shalt.err (!%p500_p7)
}
  0x2f   : > { %s623_s3 = smov 128   ;;  %s624_s7 = smov 8  }
  0x30   : > { %413 = dma.hbm_to_vmem [thread:$0]  (!%p723_p0), %s715_s30, 256, %s719_s4, %s149_s6, %s623_s3, %s623_s3, %s624_s7  }
  0x31   : > { %s176_s8 = scalar_lea.vmem [#allocation5], %s388_s26  ;;  %p393_p9 = scmp.ge.s32.totalorder %s620_s14, 1 }
  0x32   : > { %s186_s15 = sshll.u32 %s176_s8, 4  ;;  %p194_p11 = scmp.lt.s32.totalorder %s620_s14, 3  ;;  %s761_s15 = int_to_ptr.vmem [resolvable:$true] %s186_s15 }
  0x33   : > { %s392_s16 = sshll.u32 %s616_s13, 7  ;;  %s173_s26 = scalar_lea.sflag [#allocation6], %s708_s25 }
  0x34   : > { %p765_p12 = pnand %p393_p9, %p194_p11  ;;  %s772_s27 = scalar_lea.hbm %s873_s1, %s392_s16 }
  0x35   : > { %s504_s30 = scalar_lea.hbm %s772_s27, 256  ;;  %s509_s28 = scalar_lea.hbm %s873_s1, 512 }
  0x36   : > { %p505_p5 = scmp.ne.s32.totalorder %s772_s27, %s504_s30  ;;  %p510_p1 = scmp.lt.u32.totalorder %s772_s27, %s873_s1 }
  0x37   : > { %p511_p3 = scmp.lt.u32.totalorder %s509_s28, %s504_s30  ;;  %p513_p6 = scmp.lt.u32.totalorder %s504_s30, %s772_s27 }
  0x38   : > { %p507_p10 = pnand %p505_p5, %p476_p2 }
  0x39   : > { %p512_p4 = por %p511_p3, %p510_p1 }
  0x3a   : > { %p508_p13 = pneg %p507_p10 }
  0x3b   : > { %p514_p7 = por %p513_p6, %p512_p4 }
  0x3d   : > { %p515_p9 = pnand %p514_p7, %p508_p13 }
  0x3f   : > { %518 = shalt.err (!%p515_p9)
}
  0x40   : > { %s519_s16 = scalar_lea.vmem %s761_s15, 256  ;;  %s625_s19 = smov [#allocation5]  }
  0x41   : > { %p520_p11 = scmp.ne.s32.totalorder %s761_s15, %s519_s16  ;;  %s524_s20 = sshll.u32 %s625_s19, 4  ;;  %s525_s20 = int_to_ptr.vmem [resolvable:$false] %s524_s20 }
  0x42   : > { %s526_s4 = scalar_lea.vmem %s525_s20, 512  ;;  %p527_p8 = scmp.lt.s32.totalorder %s761_s15, %s525_s20 }
  0x43   : > { %p522_p5 = pnand %p520_p11, %p476_p2  ;;  %p528_p1 = scmp.lt.s32.totalorder %s526_s4, %s519_s16 }
  0x45   : > { %p523_p10 = pneg %p522_p5  ;;  %p529_p3 = por %p528_p1, %p527_p8 }
  0x47   : > { %p530_p4 = pnand %p529_p3, %p523_p10 }
  0x49   : > { %533 = shalt.err (!%p530_p4)
}
  0x4a   : > { %s626_s30 = smov 256   ;;  %198 = sbr.rel (%p765_p12) target bundleno = 110 (0x6e), region = 28 }
  0x4b   : > { %416 = dma.hbm_to_vmem [thread:$0]  (!%p723_p0), %s772_s27, 256, %s761_s15, %s173_s26, %s626_s30, %s623_s3, %s624_s7  }
  0x4c   : > { %s805_s6 = sand.u32 (!%p765_p12), 1, %s604_s10   ;;  %p883_p8 = scmp.ne.s32.totalorder (!%p765_p12), %s878_s21, 0 }
  0x4d   : > { %s394_s28 = sshll.u32 (!%p765_p12), %s805_s6, 4  ;;  %s201_s29 = scalar_lea.sflag (!%p765_p12), [#allocation3], %s805_s6 }
  0x4e   : > { %s204_s8 = scalar_lea.vmem (!%p765_p12), [#allocation2], %s394_s28 }
  0x51   : > { %587 = dma.done.wait (%p883_p8), %s201_s29, 256  }
  0x52   : > { %589 = vsyncadd (%p883_p8), %s201_s29, 4294967040  ;;  %s210_s25 = scalar_lea.sflag [#allocation6], %s805_s6  ;;  %s213_s5 = scalar_lea.vmem [#allocation5], %s394_s28 }
  0x53   : > { %591 = dma.done.wait (%p883_p8), %s210_s25, 256  }
  0x54   : > { %593 = vsyncadd (%p883_p8), %s210_s25, 4294967040  ;;  %s396_s3 = sshll.u32 %s805_s6, 3  ;;  %v241_v0 = vld [vmem:[%s204_s8] sm:$0xff]  ;;  %v397_v2 = vld [vmem:[%s204_s8 + $0x8] sm:$0xff]  ;;  %s400_s18 = sshll.u32 %s612_s12, 7 }
  0x55   : > { %v242_v1 = vld [vmem:[%s213_s5] sm:$0xff]  ;;  %v398_v4 = vld [vmem:[%s213_s5 + $0x8] sm:$0xff]  ;;  %s238_s7 = scalar_lea.vmem [#allocation7], %s396_s3  ;;  %s825_s26 = scalar_lea.hbm %s874_s2, %s400_s18 }
  0x56   : > { %v243_v3 = vsub.f32 %v241_v0, %v242_v1  ;;  %v250_v5 = vsub.f32 %v397_v2, %v398_v4  ;;  %s271_s15 = sshll.u32 %s238_s7, 4  ;;  %s256_s16 = scalar_lea.sflag [#allocation4], %s805_s6  ;;  %s820_s15 = int_to_ptr.vmem [resolvable:$true] %s271_s15 }
  0x57   : > { %s534_s19 = scalar_lea.vmem %s820_s15, 128  ;;  %p884_p2 = scmp.ne.s32.totalorder %s879_s22, 0 }
  0x58   : > { %v244_v6 = vmul.f32 %v243_v3, %v243_v3  ;;  %v251_v7 = vmul.f32 %v250_v5, %v250_v5  ;;  %p535_p0 = scmp.ne.s32.totalorder %s820_s15, %s534_s19  ;;  %s627_s12 = smov [#allocation7]  }
  0x59   : > { %s538_s20 = sshll.u32 %s627_s12, 4  ;;  %s539_s20 = int_to_ptr.vmem [resolvable:$false] %s538_s20 }
  0x5a   : > { %v253_v8 = vadd.f32 %v251_v7, %v244_v6  ;;  %p536_p12 = pnand %p535_p0, %p884_p2  ;;  %s540_s4 = scalar_lea.vmem %s539_s20, 256 }
  0x5b   : > { %p541_p6 = scmp.lt.s32.totalorder %s820_s15, %s539_s20  ;;  %p542_p7 = scmp.lt.s32.totalorder %s540_s4, %s534_s19 }
  0x5c   : > { %254 = vst [vmem:[%s238_s7] sm:$0xff] %v253_v8  ;;  %p537_p13 = pneg %p536_p12 }
  0x5d   : > { %p543_p9 = por %p542_p7, %p541_p6 }
  0x5f   : > { %p544_p11 = pnand %p543_p9, %p537_p13 }
  0x61   : > { %547 = shalt.err (!%p544_p11)
}
  0x62   : > { %s548_s30 = scalar_lea.hbm %s825_s26, 128  ;;  %s552_s29 = scalar_lea.hbm %s874_s2, 256 }
  0x63   : > { %p549_p5 = scmp.ne.s32.totalorder %s825_s26, %s548_s30  ;;  %p553_p3 = scmp.lt.u32.totalorder %s825_s26, %s874_s2 }
  0x64   : > { %p554_p4 = scmp.lt.u32.totalorder %s552_s29, %s548_s30  ;;  %p556_p0 = scmp.lt.u32.totalorder %s548_s30, %s825_s26 }
  0x65   : > { %p550_p10 = pnand %p549_p5, %p884_p2 }
  0x66   : > { %p555_p8 = por %p554_p4, %p553_p3 }
  0x67   : > { %p551_p1 = pneg %p550_p10 }
  0x68   : > { %p557_p12 = por %p556_p0, %p555_p8 }
  0x6a   : > { %p558_p13 = pnand %p557_p12, %p551_p1 }
  0x6c   : > { %561 = shalt.err (!%p558_p13)
}
  0x6d   : > { %408 = dma.vmem_to_hbm [thread:$0]  (%p884_p2), %s820_s15, 128, %s825_s26, %s256_s16  }
  0x6e PF: > { %s283_s5 = sand.u32 1, %s600_s9   ;;  %p885_p6 = scmp.ne.s32.totalorder %s880_s24, 0 }
  0x6f   : > { %p886_p7 = scmp.ge.s32.totalorder %s620_s14, 2  ;;  %s284_s3 = scalar_lea.sflag [#allocation4], %s283_s5 }
  0x71   : > { %p418_p9 = pnand %p886_p7, %p885_p6 }
  0x73   : > { %595 = dma.done.wait (!%p418_p9), %s284_s3, 128  }
  0x74   : > { %597 = vsyncadd (!%p418_p9), %s284_s3, 4294967168  ;;  %s21_s14 = sadd.s32 1, %s620_s14   ;;  %s887_s9 = smov %s604_s10 }
  0x75   : > { %p18_p11 = scmp.ge.s32.totalorder %s21_s14, 4   ;;  %s888_s10 = smov %s608_s11 }
  0x76   : > { %s889_s11 = smov %s699_s23  ;;  %s890_s12 = smov %s616_s13 }
  0x77   : > { %s891_s13 = smov %s893_s17  ;;  %20 = sbr.rel (!%p18_p11) target bundleno = 8 (0x8), region = 88 }
  0x7e   :  { %289 = vsyncpa [#allocation3], 1 }
  0x7f   :  { %291 = vsyncpa [#allocation3 + $0x1], 1 }
  0x80   :  { %292 = vsyncpa [#allocation6], 1 }
  0x81   :  { %294 = vsyncpa [#allocation6 + $0x1], 1 }
  0x82   :  { %295 = vsyncpa [#allocation4], 1 }
  0x83   :  { %297 = vsyncpa [#allocation4 + $0x1], 1 }

</bundles_post_ra>
